<compile_context>
chip_gen: v6e
topology: v6e:2x2x1
jax: 0.10.0
libtpu: 0.0.40
codegen_flags: <defaults>
</compile_context>

<pallas_src>
import functools
import inspect
import math

import jax
import jax.numpy as jnp
import numpy as np
from jax import lax
from jax.experimental import pallas as pl
from jax.experimental.pallas import tpu as pltpu


# ---------------------------------------------------------------------------
# math helpers (pure jnp -> usable inside the Pallas kernel and the reference)
# ---------------------------------------------------------------------------
_SQRT_2_OVER_PI = 0.7978845608028654


def _gelu(x):
    # BERT gelu, tanh form.  tanh lowers to the EUP slot (off the VALU).
    return 0.5 * x * (1.0 + jnp.tanh(_SQRT_2_OVER_PI * (x + 0.044715 * x * x * x)))


def _layer_norm(x, gamma, beta, eps=1e-12):
    mu = jnp.mean(x, axis=-1, keepdims=True)
    xc = x - mu
    var = jnp.mean(xc * xc, axis=-1, keepdims=True)
    return xc * lax.rsqrt(var + eps) * gamma + beta


# ---------------------------------------------------------------------------
# Pallas kernel: one full TPBertLayer (attention + con1 + MLP + con2) for one
# (batch, query-tile) grid point.  K/V for the whole sequence live in VMEM
# scratch and are recomputed only when the query-tile index wraps to 0.
# ---------------------------------------------------------------------------
def tp_bert_layer_kernel(
    xf_ref, mask_ref,
    wq_ref, bq_ref, wk_ref, bk_ref, wv_ref, bv_ref,
    wo_ref, bo_ref, ln1_g_ref, ln1_b_ref,
    w1_ref, b1_ref, w2_ref, b2_ref, ln2_g_ref, ln2_b_ref,
    out_ref,
    k_sc, v_sc, ctx_sc,
    *, num_heads, head_size, q_tile,
):
    S = xf_ref.shape[1]
    nh, hd = num_heads, head_size
    inv_sqrt_d = 1.0 / math.sqrt(head_size)

    # ---- K/V projections: ONCE per batch row, reused by every query tile ----
    @pl.when(pl.program_id(1) == 0)
    def _project_kv():
        xf_b = xf_ref[0].astype(jnp.bfloat16)                          # (S, H)
        k = jnp.dot(xf_b, wk_ref[...], preferred_element_type=jnp.float32) + bk_ref[...]
        v = jnp.dot(xf_b, wv_ref[...], preferred_element_type=jnp.float32) + bv_ref[...]
        for h in range(nh):            # head split once per row, not per tile
            sl = slice(h * hd, (h + 1) * hd)
            k_sc[h] = k[:, sl].astype(jnp.bfloat16)
            v_sc[h] = v[:, sl].astype(jnp.bfloat16)

    # ---- current query tile, sliced out of the resident full-sequence block --
    row0 = pl.multiple_of(pl.program_id(1) * q_tile, q_tile)
    xq = xf_ref[0, pl.ds(row0, q_tile), :]                             # (TQ, H)
    xq_f = xq.astype(jnp.float32)                                      # residual path
    xq_b = xq.astype(jnp.bfloat16)

    q = jnp.dot(xq_b, wq_ref[...], preferred_element_type=jnp.float32) + bq_ref[...]
    q_b = (q * inv_sqrt_d).astype(jnp.bfloat16)    # fold 1/sqrt(d) into q once

    mask_b = jnp.broadcast_to(mask_ref[0], (q_tile, S))   # hoisted additive mask

    # TODO(synk): for large head counts switch this static unroll to
    # lax.fori_loop(..., unroll=True) to bound vreg live ranges.
    for h in range(nh):
        sl = slice(h * hd, (h + 1) * hd)
        qh = q_b[:, sl]                                                # (TQ, hd)
        scores = lax.dot_general(qh, k_sc[h], (((1,), (1,)), ((), ())),
                                 preferred_element_type=jnp.float32)   # q @ k.T
        scores = scores + mask_b                                       # (TQ, S)
        scores = scores - jnp.max(scores, axis=-1, keepdims=True)
        p = jnp.exp(scores)
        denom = jnp.sum(p, axis=-1, keepdims=True)
        probs = p * pl.reciprocal(denom, approx=True)                  # EUP recip
        ctx_h = jnp.dot(probs.astype(jnp.bfloat16), v_sc[h],
                        preferred_element_type=jnp.float32)            # (TQ, hd)
        ctx_sc[:, sl] = ctx_h.astype(jnp.bfloat16)   # in-place write, no concat

    # single output projection with K = P (merged over heads)
    att = jnp.dot(ctx_sc[...], wo_ref[...],
                  preferred_element_type=jnp.float32) + bo_ref[...]
    # TODO(synk): reduce_from_tensor_model_parallel_region is a TP all-reduce;
    # identity on a single shard.

    # ---- BertConnectLayer 1: residual + LayerNorm (dropout = identity) ----
    y1 = _layer_norm(xq_f + att, ln1_g_ref[...], ln1_b_ref[...])

    # ---- TPBertMLP: dense1 -> gelu -> dense2 ----
    h1 = _gelu(jnp.dot(y1.astype(jnp.bfloat16), w1_ref[...],
                       preferred_element_type=jnp.float32) + b1_ref[...])
    mlp = jnp.dot(h1.astype(jnp.bfloat16), w2_ref[...],
                  preferred_element_type=jnp.float32) + b2_ref[...]

    # ---- BertConnectLayer 2 ----
    y2 = _layer_norm(y1 + mlp, ln2_g_ref[...], ln2_b_ref[...])
    out_ref[0] = y2.astype(out_ref.dtype)


# ---------------------------------------------------------------------------
# Wrappers
# ---------------------------------------------------------------------------
def _supports_single_buffering():
    # Decide pl.Buffered(1) support ONCE at import time (feature check), no
    # runtime probe compile / host sync.
    if not hasattr(pl, "Buffered"):
        return False
    try:
        return "pipeline_mode" in inspect.signature(pl.BlockSpec).parameters
    except (TypeError, ValueError):
        return False


_SINGLE_BUFFER_WEIGHTS = _supports_single_buffering()


def _const_spec(shape):
    """BlockSpec for a grid-invariant (weight / bias) operand.

    The block never changes across the grid, so a single resident copy
    suffices; single-buffering halves weight VMEM (matters most on v7x 64MiB).
    """
    ndim = len(shape)
    index_map = lambda b, q, _n=ndim: (0,) * _n
    if _SINGLE_BUFFER_WEIGHTS:
        return pl.BlockSpec(shape, index_map, pipeline_mode=pl.Buffered(1))
    return pl.BlockSpec(shape, index_map)


def _vmem_limit_bytes():
    # Generation-aware: ~87.5% of this chip's physical VMEM (64 MiB on v7x,
    # 128 MiB on v5e/v6e), leaving headroom for compiler scratch.
    cap = 128 * 1024 * 1024
    if hasattr(pltpu, "get_tpu_info"):
        try:
            info_cap = getattr(pltpu.get_tpu_info(), "vmem_capacity_bytes", None)
            if info_cap:
                cap = int(info_cap)
        except Exception:  # hardware-info query failure: fall back to 128 MiB
            pass
    return (cap * 7) // 8


def _q_tiling(S, max_tile=256):
    """Query tiling: TQ <= 256 (fills the 128/256-wide MXU M dim while
    bounding the (TQ,S) score buffers), TQ a multiple of 8, robust to any S
    via padding (no giant single-tile fallback)."""
    nq = -(-S // max_tile)          # cdiv
    tq = -(-S // nq)
    tq = ((tq + 7) // 8) * 8
    return tq, nq, tq * nq


def tp_bert_layer(x, mask, lp, *, num_heads, head_size, out_dtype=jnp.float32):
    B, S, H = x.shape
    P = lp["wq"].shape[1]
    I = lp["w1"].shape[1]
    assert P == num_heads * head_size
    TQ, nq, S_pad = _q_tiling(S)

    if S_pad != S:
        pad = S_pad - S
        # Padded key positions are masked out (-10000); padded query rows are
        # sliced off below.
        x = jnp.pad(x, ((0, 0), (0, pad), (0, 0)))
        mask = jnp.pad(mask, ((0, 0), (0, 0), (0, pad)), constant_values=-10000.0)

    kernel = functools.partial(tp_bert_layer_kernel, num_heads=num_heads,
                               head_size=head_size, q_tile=TQ)

    in_specs = [
        pl.BlockSpec((1, S_pad, H), lambda b, q: (b, 0, 0)),   # full sequence (Q rows sliced in-kernel)
        pl.BlockSpec((1, 1, S_pad), lambda b, q: (b, 0, 0)),   # additive attention mask
        _const_spec((H, P)), _const_spec((1, P)),              # query   W, b
        _const_spec((H, P)), _const_spec((1, P)),              # key     W, b
        _const_spec((H, P)), _const_spec((1, P)),              # value   W, b
        _const_spec((P, H)), _const_spec((1, H)),              # attention output dense
        _const_spec((1, H)), _const_spec((1, H)),              # LayerNorm 1
        _const_spec((H, I)), _const_spec((1, I)),              # MLP dense1
        _const_spec((I, H)), _const_spec((1, H)),              # MLP dense2
        _const_spec((1, H)), _const_spec((1, H)),              # LayerNorm 2
    ]

    out = pl.pallas_call(
        kernel,
        grid=(B, nq),
        in_specs=in_specs,
        out_specs=pl.BlockSpec((1, TQ, H), lambda b, q: (b, q, 0)),
        out_shape=jax.ShapeDtypeStruct((B, S_pad, H), out_dtype),
        scratch_shapes=[
            pltpu.VMEM((num_heads, S_pad, head_size), jnp.bfloat16),   # K (head-major)
            pltpu.VMEM((num_heads, S_pad, head_size), jnp.bfloat16),   # V (head-major)
            pltpu.VMEM((TQ, P), jnp.bfloat16),                         # per-tile context
        ],
        compiler_params=pltpu.CompilerParams(
            # batch parallel (megacore on v7x); q-axis arbitrary so the K/V
            # scratch persists across query tiles of the same sequence.
            dimension_semantics=("parallel", "arbitrary"),
            vmem_limit_bytes=_vmem_limit_bytes()),
    )(
        x, mask,
        lp["wq"], lp["bq"], lp["wk"], lp["bk"], lp["wv"], lp["bv"],
        lp["wo"], lp["bo"], lp["ln1_g"], lp["ln1_b"],
        lp["w1"], lp["b1"], lp["w2"], lp["b2"], lp["ln2_g"], lp["ln2_b"],
    )
    if S_pad != S:
        out = out[:, :S, :]
    return out


def tp_bert_encoder(x, mask, params, *, num_heads, head_size):
    # TODO(synk): cross-layer weight prefetch (fused layer grid axis with
    # scalar-prefetch weight indexing, or cross-call semaphore futures) would
    # hide the per-layer cold HBM weight read; layers are separate pallas_calls.
    n = len(params)
    for i, lp in enumerate(params):
        # bf16 inter-layer activation carry (f32 math inside each layer);
        # the final layer returns f32.
        out_dtype = jnp.float32 if i == n - 1 else jnp.bfloat16
        x = tp_bert_layer(x, mask, lp, num_heads=num_heads,
                          head_size=head_size, out_dtype=out_dtype)
    return x


# ---------------------------------------------------------------------------
# Pure-JAX reference (f32 math; same bf16-stored weights upcast to f32; mirrors
# the kernel's bf16 inter-layer activation carry)
# ---------------------------------------------------------------------------
def _f32(t):
    return t.astype(jnp.float32)


def reference_layer(x, mask, lp, *, num_heads, head_size):
    B, S, H = x.shape
    q = x @ _f32(lp["wq"]) + lp["bq"][0]
    k = x @ _f32(lp["wk"]) + lp["bk"][0]
    v = x @ _f32(lp["wv"]) + lp["bv"][0]

    def split(t):
        return t.reshape(B, S, num_heads, head_size).transpose(0, 2, 1, 3)

    qh, kh, vh = split(q), split(k), split(v)
    scores = jnp.einsum("bhqd,bhkd->bhqk", qh, kh) / math.sqrt(head_size)
    scores = scores + mask[:, None, :, :]            # (B,1,1,S) broadcast
    probs = jax.nn.softmax(scores, axis=-1)
    ctx = jnp.einsum("bhqk,bhkd->bhqd", probs, vh)
    ctx = ctx.transpose(0, 2, 1, 3).reshape(B, S, num_heads * head_size)
    att = ctx @ _f32(lp["wo"]) + lp["bo"][0]
    y1 = _layer_norm(x + att, lp["ln1_g"][0], lp["ln1_b"][0])
    h1 = _gelu(y1 @ _f32(lp["w1"]) + lp["b1"][0])
    mlp = h1 @ _f32(lp["w2"]) + lp["b2"][0]
    return _layer_norm(y1 + mlp, lp["ln2_g"][0], lp["ln2_b"][0])


def reference_encoder(x, mask, params, *, num_heads, head_size):
    n = len(params)
    for i, lp in enumerate(params):
        x = reference_layer(x, mask, lp, num_heads=num_heads, head_size=head_size)
        if i < n - 1:
            x = x.astype(jnp.bfloat16).astype(jnp.float32)   # mirror bf16 carry
    return x


# ---------------------------------------------------------------------------
# Deterministic parameter construction (matmul weights stored in bf16)
# ---------------------------------------------------------------------------
def init_params(key, num_layers, H, P, I):
    def w(k, shape, scale=0.02):
        return scale * jax.random.normal(k, shape, jnp.float32)

    params = []
    for _ in range(num_layers):
        key, *ks = jax.random.split(key, 13)
        params.append({
            "wq": w(ks[0], (H, P)).astype(jnp.bfloat16),  "bq": w(ks[1], (1, P)),
            "wk": w(ks[2], (H, P)).astype(jnp.bfloat16),  "bk": w(ks[3], (1, P)),
            "wv": w(ks[4], (H, P)).astype(jnp.bfloat16),  "bv": w(ks[5], (1, P)),
            "wo": w(ks[6], (P, H)).astype(jnp.bfloat16),  "bo": w(ks[7], (1, H)),
            "ln1_g": jnp.ones((1, H), jnp.float32),
            "ln1_b": jnp.zeros((1, H), jnp.float32),
            "w1": w(ks[8], (H, I)).astype(jnp.bfloat16),  "b1": w(ks[9], (1, I)),
            "w2": w(ks[10], (I, H)).astype(jnp.bfloat16), "b2": w(ks[11], (1, H)),
            "ln2_g": jnp.ones((1, H), jnp.float32),
            "ln2_b": jnp.zeros((1, H), jnp.float32),
        })
    return params


if __name__ == "__main__":
    # config (synthetic TP shard):
    #   hidden_size=32, num_attention_heads=4 -> att_head_size=8,
    #   tp_num_attention_heads=2 -> qkv_projection_size=16,
    #   tp_intermediate_size=64, num_hidden_layers=2
    B, S, H = 2, 8, 32
    tp_num_attention_heads = 2
    att_head_size = 8
    P = tp_num_attention_heads * att_head_size
    I = 64
    num_layers = 2

    key = jax.random.PRNGKey(0)
    k_x, k_p = jax.random.split(key)
    x = jax.random.normal(k_x, (B, S, H), jnp.float32)

    # attention mask [1,1,...,1,0,...,0] -> additive mask (0 / -10000), (B,1,S)
    valid_lens = jnp.array([S, 5])
    keep = (jnp.arange(S)[None, :] < valid_lens[:, None]).astype(jnp.float32)
    add_mask = ((1.0 - keep) * -10000.0).reshape(B, 1, S)

    params = init_params(k_p, num_layers, H, P, I)

    out = tp_bert_encoder(x, add_mask, params,
                          num_heads=tp_num_attention_heads,
                          head_size=att_head_size)
    out = jax.block_until_ready(out)

    ref = reference_encoder(x, add_mask, params,
                            num_heads=tp_num_attention_heads,
                            head_size=att_head_size)
    assert out.shape == (B, S, H)
    assert np.allclose(np.asarray(out), np.asarray(ref), rtol=2e-2, atol=2e-2), \
        "Pallas output does not match pure-JAX reference"
    print("KERNEL_OK")
</pallas_src>

<mosaic_0001>
module attributes {stable_mosaic.version = 11 : i64} {
  func.func @tp_bert_layer_kernel(%arg0: i32, %arg1: i32, %arg2: memref<1x8x32xf32, #tpu.memory_space<vmem>>, %arg3: memref<1x1x8xf32, #tpu.memory_space<vmem>>, %arg4: memref<32x16xbf16, #tpu.memory_space<vmem>>, %arg5: memref<1x16xf32, #tpu.memory_space<vmem>>, %arg6: memref<32x16xbf16, #tpu.memory_space<vmem>>, %arg7: memref<1x16xf32, #tpu.memory_space<vmem>>, %arg8: memref<32x16xbf16, #tpu.memory_space<vmem>>, %arg9: memref<1x16xf32, #tpu.memory_space<vmem>>, %arg10: memref<16x32xbf16, #tpu.memory_space<vmem>>, %arg11: memref<1x32xf32, #tpu.memory_space<vmem>>, %arg12: memref<1x32xf32, #tpu.memory_space<vmem>>, %arg13: memref<1x32xf32, #tpu.memory_space<vmem>>, %arg14: memref<32x64xbf16, #tpu.memory_space<vmem>>, %arg15: memref<1x64xf32, #tpu.memory_space<vmem>>, %arg16: memref<64x32xbf16, #tpu.memory_space<vmem>>, %arg17: memref<1x32xf32, #tpu.memory_space<vmem>>, %arg18: memref<1x32xf32, #tpu.memory_space<vmem>>, %arg19: memref<1x32xf32, #tpu.memory_space<vmem>>, %arg20: memref<1x8x32xbf16, #tpu.memory_space<vmem>>, %arg21: memref<2x8x8xbf16, #tpu.memory_space<vmem>>, %arg22: memref<2x8x8xbf16, #tpu.memory_space<vmem>>, %arg23: memref<8x16xbf16, #tpu.memory_space<vmem>>) attributes {dimension_semantics = [#tpu.dimension_semantics<parallel>, #tpu.dimension_semantics<arbitrary>], iteration_bounds = array<i64: 2, 1>, scalar_prefetch = 0 : i64, scratch_operands = 3 : i64, tpu.core_type = #tpu.core_type<tc>, window_params = [{transform_indices = @transform_0, window_bounds = array<i64: 1, 8, 32>}, {transform_indices = @transform_1, window_bounds = array<i64: 1, 1, 8>}, {pipeline_mode = #tpu.pipeline_mode<synchronous>, transform_indices = @transform_2, window_bounds = array<i64: 32, 16>}, {pipeline_mode = #tpu.pipeline_mode<synchronous>, transform_indices = @transform_3, window_bounds = array<i64: 1, 16>}, {pipeline_mode = #tpu.pipeline_mode<synchronous>, transform_indices = @transform_4, window_bounds = array<i64: 32, 16>}, {pipeline_mode = #tpu.pipeline_mode<synchronous>, transform_indices = @transform_5, window_bounds = array<i64: 1, 16>}, {pipeline_mode = #tpu.pipeline_mode<synchronous>, transform_indices = @transform_6, window_bounds = array<i64: 32, 16>}, {pipeline_mode = #tpu.pipeline_mode<synchronous>, transform_indices = @transform_7, window_bounds = array<i64: 1, 16>}, {pipeline_mode = #tpu.pipeline_mode<synchronous>, transform_indices = @transform_8, window_bounds = array<i64: 16, 32>}, {pipeline_mode = #tpu.pipeline_mode<synchronous>, transform_indices = @transform_9, window_bounds = array<i64: 1, 32>}, {pipeline_mode = #tpu.pipeline_mode<synchronous>, transform_indices = @transform_10, window_bounds = array<i64: 1, 32>}, {pipeline_mode = #tpu.pipeline_mode<synchronous>, transform_indices = @transform_11, window_bounds = array<i64: 1, 32>}, {pipeline_mode = #tpu.pipeline_mode<synchronous>, transform_indices = @transform_12, window_bounds = array<i64: 32, 64>}, {pipeline_mode = #tpu.pipeline_mode<synchronous>, transform_indices = @transform_13, window_bounds = array<i64: 1, 64>}, {pipeline_mode = #tpu.pipeline_mode<synchronous>, transform_indices = @transform_14, window_bounds = array<i64: 64, 32>}, {pipeline_mode = #tpu.pipeline_mode<synchronous>, transform_indices = @transform_15, window_bounds = array<i64: 1, 32>}, {pipeline_mode = #tpu.pipeline_mode<synchronous>, transform_indices = @transform_16, window_bounds = array<i64: 1, 32>}, {pipeline_mode = #tpu.pipeline_mode<synchronous>, transform_indices = @transform_17, window_bounds = array<i64: 1, 32>}, {transform_indices = @transform_18, window_bounds = array<i64: 1, 8, 32>}]} {
    %c0_i32 = arith.constant 0 : i32
    %0 = arith.cmpi eq, %arg1, %c0_i32 : i32
    %1 = arith.extui %0 : i1 to i32
    %c0_i32_0 = arith.constant 0 : i32
    %2 = arith.cmpi ne, %1, %c0_i32_0 : i32
    scf.if %2 {
      %c0_74 = arith.constant 0 : index
      %c0_75 = arith.constant 0 : index
      %c0_76 = arith.constant 0 : index
      %144 = vector.load %arg2[%c0_74, %c0_75, %c0_76] : memref<1x8x32xf32, #tpu.memory_space<vmem>>, vector<1x8x32xf32>
      %145 = vector.shape_cast %144 : vector<1x8x32xf32> to vector<8x32xf32>
      %146 = arith.truncf %145 : vector<8x32xf32> to vector<8x32xbf16>
      %c0_77 = arith.constant 0 : index
      %c0_78 = arith.constant 0 : index
      %147 = vector.load %arg6[%c0_77, %c0_78] : memref<32x16xbf16, #tpu.memory_space<vmem>>, vector<32x16xbf16>
      %cst_79 = arith.constant dense<0.000000e+00> : vector<8x16xf32>
      %148 = tpu.matmul %146, %147, %cst_79 {dimension_numbers = #tpu.dot_dimension_numbers<[1], [0], [0], [1], [0, 0, 1, 1], [], []>} : vector<8x32xbf16>, vector<32x16xbf16>, vector<8x16xf32> -> vector<8x16xf32>
      %c0_80 = arith.constant 0 : index
      %c0_81 = arith.constant 0 : index
      %149 = vector.load %arg7[%c0_80, %c0_81] : memref<1x16xf32, #tpu.memory_space<vmem>>, vector<1x16xf32>
      %150 = vector.broadcast %149 : vector<1x16xf32> to vector<8x16xf32>
      %151 = arith.addf %148, %150 : vector<8x16xf32>
      %c0_82 = arith.constant 0 : index
      %c0_83 = arith.constant 0 : index
      %152 = vector.load %arg8[%c0_82, %c0_83] : memref<32x16xbf16, #tpu.memory_space<vmem>>, vector<32x16xbf16>
      %cst_84 = arith.constant dense<0.000000e+00> : vector<8x16xf32>
      %153 = tpu.matmul %146, %152, %cst_84 {dimension_numbers = #tpu.dot_dimension_numbers<[1], [0], [0], [1], [0, 0, 1, 1], [], []>} : vector<8x32xbf16>, vector<32x16xbf16>, vector<8x16xf32> -> vector<8x16xf32>
      %c0_85 = arith.constant 0 : index
      %c0_86 = arith.constant 0 : index
      %154 = vector.load %arg9[%c0_85, %c0_86] : memref<1x16xf32, #tpu.memory_space<vmem>>, vector<1x16xf32>
      %155 = vector.broadcast %154 : vector<1x16xf32> to vector<8x16xf32>
      %156 = arith.addf %153, %155 : vector<8x16xf32>
      %157 = vector.extract_strided_slice %151 {offsets = [0, 0], sizes = [8, 8], strides = [1, 1]} : vector<8x16xf32> to vector<8x8xf32>
      %158 = arith.truncf %157 : vector<8x8xf32> to vector<8x8xbf16>
      %c0_87 = arith.constant 0 : index
      %c0_88 = arith.constant 0 : index
      %c0_89 = arith.constant 0 : index
      %159 = vector.load %arg21[%c0_87, %c0_88, %c0_89] : memref<2x8x8xbf16, #tpu.memory_space<vmem>>, vector<1x8x8xbf16>
      %160 = vector.shape_cast %159 : vector<1x8x8xbf16> to vector<8x8xbf16>
      %161 = vector.shape_cast %158 : vector<8x8xbf16> to vector<1x8x8xbf16>
      tpu.vector_store %arg21[%c0_87, %c0_88, %c0_89], %161 {strides = array<i32>} : memref<2x8x8xbf16, #tpu.memory_space<vmem>>, vector<1x8x8xbf16>,
      %162 = vector.extract_strided_slice %156 {offsets = [0, 0], sizes = [8, 8], strides = [1, 1]} : vector<8x16xf32> to vector<8x8xf32>
      %163 = arith.truncf %162 : vector<8x8xf32> to vector<8x8xbf16>
      %c0_90 = arith.constant 0 : index
      %c0_91 = arith.constant 0 : index
      %c0_92 = arith.constant 0 : index
      %164 = vector.load %arg22[%c0_90, %c0_91, %c0_92] : memref<2x8x8xbf16, #tpu.memory_space<vmem>>, vector<1x8x8xbf16>
      %165 = vector.shape_cast %164 : vector<1x8x8xbf16> to vector<8x8xbf16>
      %166 = vector.shape_cast %163 : vector<8x8xbf16> to vector<1x8x8xbf16>
      tpu.vector_store %arg22[%c0_90, %c0_91, %c0_92], %166 {strides = array<i32>} : memref<2x8x8xbf16, #tpu.memory_space<vmem>>, vector<1x8x8xbf16>,
      %167 = vector.extract_strided_slice %151 {offsets = [0, 8], sizes = [8, 8], strides = [1, 1]} : vector<8x16xf32> to vector<8x8xf32>
      %168 = arith.truncf %167 : vector<8x8xf32> to vector<8x8xbf16>
      %c1_93 = arith.constant 1 : index
      %c0_94 = arith.constant 0 : index
      %c0_95 = arith.constant 0 : index
      %169 = vector.load %arg21[%c1_93, %c0_94, %c0_95] : memref<2x8x8xbf16, #tpu.memory_space<vmem>>, vector<1x8x8xbf16>
      %170 = vector.shape_cast %169 : vector<1x8x8xbf16> to vector<8x8xbf16>
      %171 = vector.shape_cast %168 : vector<8x8xbf16> to vector<1x8x8xbf16>
      tpu.vector_store %arg21[%c1_93, %c0_94, %c0_95], %171 {strides = array<i32>} : memref<2x8x8xbf16, #tpu.memory_space<vmem>>, vector<1x8x8xbf16>,
      %172 = vector.extract_strided_slice %156 {offsets = [0, 8], sizes = [8, 8], strides = [1, 1]} : vector<8x16xf32> to vector<8x8xf32>
      %173 = arith.truncf %172 : vector<8x8xf32> to vector<8x8xbf16>
      %c1_96 = arith.constant 1 : index
      %c0_97 = arith.constant 0 : index
      %c0_98 = arith.constant 0 : index
      %174 = vector.load %arg22[%c1_96, %c0_97, %c0_98] : memref<2x8x8xbf16, #tpu.memory_space<vmem>>, vector<1x8x8xbf16>
      %175 = vector.shape_cast %174 : vector<1x8x8xbf16> to vector<8x8xbf16>
      %176 = vector.shape_cast %173 : vector<8x8xbf16> to vector<1x8x8xbf16>
      tpu.vector_store %arg22[%c1_96, %c0_97, %c0_98], %176 {strides = array<i32>} : memref<2x8x8xbf16, #tpu.memory_space<vmem>>, vector<1x8x8xbf16>,
    } else {
    }
    %c8_i32 = arith.constant 8 : i32
    %3 = arith.muli %arg1, %c8_i32 : i32
    %4 = tpu.assume_multiple %3, 8 : i32
    %c0 = arith.constant 0 : index
    %5 = arith.index_cast %4 : i32 to index
    %c0_1 = arith.constant 0 : index
    %6 = vector.load %arg2[%c0, %5, %c0_1] : memref<1x8x32xf32, #tpu.memory_space<vmem>>, vector<1x8x32xf32>
    %7 = vector.shape_cast %6 : vector<1x8x32xf32> to vector<8x32xf32>
    %8 = arith.truncf %7 : vector<8x32xf32> to vector<8x32xbf16>
    %c0_2 = arith.constant 0 : index
    %c0_3 = arith.constant 0 : index
    %9 = vector.load %arg4[%c0_2, %c0_3] : memref<32x16xbf16, #tpu.memory_space<vmem>>, vector<32x16xbf16>
    %cst = arith.constant dense<0.000000e+00> : vector<8x16xf32>
    %10 = tpu.matmul %8, %9, %cst {dimension_numbers = #tpu.dot_dimension_numbers<[1], [0], [0], [1], [0, 0, 1, 1], [], []>} : vector<8x32xbf16>, vector<32x16xbf16>, vector<8x16xf32> -> vector<8x16xf32>
    %c0_4 = arith.constant 0 : index
    %c0_5 = arith.constant 0 : index
    %11 = vector.load %arg5[%c0_4, %c0_5] : memref<1x16xf32, #tpu.memory_space<vmem>>, vector<1x16xf32>
    %12 = vector.broadcast %11 : vector<1x16xf32> to vector<8x16xf32>
    %13 = arith.addf %10, %12 : vector<8x16xf32>
    %cst_6 = arith.constant 0.353553385 : f32
    %14 = vector.broadcast %cst_6 : f32 to vector<8x16xf32>
    %15 = arith.mulf %13, %14 : vector<8x16xf32>
    %16 = arith.truncf %15 : vector<8x16xf32> to vector<8x16xbf16>
    %c0_7 = arith.constant 0 : index
    %c0_8 = arith.constant 0 : index
    %c0_9 = arith.constant 0 : index
    %17 = vector.load %arg3[%c0_7, %c0_8, %c0_9] : memref<1x1x8xf32, #tpu.memory_space<vmem>>, vector<1x1x8xf32>
    %18 = vector.shape_cast %17 : vector<1x1x8xf32> to vector<1x8xf32>
    %19 = vector.shape_cast %18 : vector<1x8xf32> to vector<1x8xf32>
    %20 = vector.broadcast %19 : vector<1x8xf32> to vector<8x8xf32>
    %21 = vector.extract_strided_slice %16 {offsets = [0, 0], sizes = [8, 8], strides = [1, 1]} : vector<8x16xbf16> to vector<8x8xbf16>
    %c0_10 = arith.constant 0 : index
    %c0_11 = arith.constant 0 : index
    %c0_12 = arith.constant 0 : index
    %22 = vector.load %arg21[%c0_10, %c0_11, %c0_12] : memref<2x8x8xbf16, #tpu.memory_space<vmem>>, vector<1x8x8xbf16>
    %23 = vector.shape_cast %22 : vector<1x8x8xbf16> to vector<8x8xbf16>
    %cst_13 = arith.constant dense<0.000000e+00> : vector<8x8xf32>
    %24 = tpu.matmul %21, %23, %cst_13 {dimension_numbers = #tpu.dot_dimension_numbers<[1], [1], [0], [0], [0, 0, 1, 0], [], []>} : vector<8x8xbf16>, vector<8x8xbf16>, vector<8x8xf32> -> vector<8x8xf32>
    %25 = arith.addf %24, %20 : vector<8x8xf32>
    %cst_14 = arith.constant dense<0xFF800000> : vector<8xf32>
    %26 = vector.multi_reduction <maximumf>, %25, %cst_14 [1] : vector<8x8xf32> to vector<8xf32>
    %27 = vector.shape_cast %26 : vector<8xf32> to vector<8x1xf32>
    %28 = vector.broadcast %27 : vector<8x1xf32> to vector<8x8xf32>
    %29 = arith.subf %25, %28 : vector<8x8xf32>
    %30 = math.exp %29 : vector<8x8xf32>
    %cst_15 = arith.constant dense<0.000000e+00> : vector<8xf32>
    %31 = vector.multi_reduction <add>, %30, %cst_15 [1] : vector<8x8xf32> to vector<8xf32>
    %32 = vector.shape_cast %31 : vector<8xf32> to vector<8x1xf32>
    %33 = tpu.reciprocal %32 {approx = true} : vector<8x1xf32> -> vector<8x1xf32>
    %34 = vector.broadcast %33 : vector<8x1xf32> to vector<8x8xf32>
    %35 = arith.mulf %30, %34 : vector<8x8xf32>
    %36 = arith.truncf %35 : vector<8x8xf32> to vector<8x8xbf16>
    %c0_16 = arith.constant 0 : index
    %c0_17 = arith.constant 0 : index
    %c0_18 = arith.constant 0 : index
    %37 = vector.load %arg22[%c0_16, %c0_17, %c0_18] : memref<2x8x8xbf16, #tpu.memory_space<vmem>>, vector<1x8x8xbf16>
    %38 = vector.shape_cast %37 : vector<1x8x8xbf16> to vector<8x8xbf16>
    %cst_19 = arith.constant dense<0.000000e+00> : vector<8x8xf32>
    %39 = tpu.matmul %36, %38, %cst_19 {dimension_numbers = #tpu.dot_dimension_numbers<[1], [0], [0], [1], [0, 0, 1, 1], [], []>} : vector<8x8xbf16>, vector<8x8xbf16>, vector<8x8xf32> -> vector<8x8xf32>
    %40 = arith.truncf %39 : vector<8x8xf32> to vector<8x8xbf16>
    %c0_20 = arith.constant 0 : index
    %c0_21 = arith.constant 0 : index
    %41 = vector.load %arg23[%c0_20, %c0_21] : memref<8x16xbf16, #tpu.memory_space<vmem>>, vector<8x8xbf16>
    tpu.vector_store %arg23[%c0_20, %c0_21], %40 {strides = array<i32>} : memref<8x16xbf16, #tpu.memory_space<vmem>>, vector<8x8xbf16>,
    %42 = vector.extract_strided_slice %16 {offsets = [0, 8], sizes = [8, 8], strides = [1, 1]} : vector<8x16xbf16> to vector<8x8xbf16>
    %c1 = arith.constant 1 : index
    %c0_22 = arith.constant 0 : index
    %c0_23 = arith.constant 0 : index
    %43 = vector.load %arg21[%c1, %c0_22, %c0_23] : memref<2x8x8xbf16, #tpu.memory_space<vmem>>, vector<1x8x8xbf16>
    %44 = vector.shape_cast %43 : vector<1x8x8xbf16> to vector<8x8xbf16>
    %cst_24 = arith.constant dense<0.000000e+00> : vector<8x8xf32>
    %45 = tpu.matmul %42, %44, %cst_24 {dimension_numbers = #tpu.dot_dimension_numbers<[1], [1], [0], [0], [0, 0, 1, 0], [], []>} : vector<8x8xbf16>, vector<8x8xbf16>, vector<8x8xf32> -> vector<8x8xf32>
    %46 = arith.addf %45, %20 : vector<8x8xf32>
    %cst_25 = arith.constant dense<0xFF800000> : vector<8xf32>
    %47 = vector.multi_reduction <maximumf>, %46, %cst_25 [1] : vector<8x8xf32> to vector<8xf32>
    %48 = vector.shape_cast %47 : vector<8xf32> to vector<8x1xf32>
    %49 = vector.broadcast %48 : vector<8x1xf32> to vector<8x8xf32>
    %50 = arith.subf %46, %49 : vector<8x8xf32>
    %51 = math.exp %50 : vector<8x8xf32>
    %cst_26 = arith.constant dense<0.000000e+00> : vector<8xf32>
    %52 = vector.multi_reduction <add>, %51, %cst_26 [1] : vector<8x8xf32> to vector<8xf32>
    %53 = vector.shape_cast %52 : vector<8xf32> to vector<8x1xf32>
    %54 = tpu.reciprocal %53 {approx = true} : vector<8x1xf32> -> vector<8x1xf32>
    %55 = vector.broadcast %54 : vector<8x1xf32> to vector<8x8xf32>
    %56 = arith.mulf %51, %55 : vector<8x8xf32>
    %57 = arith.truncf %56 : vector<8x8xf32> to vector<8x8xbf16>
    %c1_27 = arith.constant 1 : index
    %c0_28 = arith.constant 0 : index
    %c0_29 = arith.constant 0 : index
    %58 = vector.load %arg22[%c1_27, %c0_28, %c0_29] : memref<2x8x8xbf16, #tpu.memory_space<vmem>>, vector<1x8x8xbf16>
    %59 = vector.shape_cast %58 : vector<1x8x8xbf16> to vector<8x8xbf16>
    %cst_30 = arith.constant dense<0.000000e+00> : vector<8x8xf32>
    %60 = tpu.matmul %57, %59, %cst_30 {dimension_numbers = #tpu.dot_dimension_numbers<[1], [0], [0], [1], [0, 0, 1, 1], [], []>} : vector<8x8xbf16>, vector<8x8xbf16>, vector<8x8xf32> -> vector<8x8xf32>
    %61 = arith.truncf %60 : vector<8x8xf32> to vector<8x8xbf16>
    %c0_31 = arith.constant 0 : index
    %c8 = arith.constant 8 : index
    %62 = vector.load %arg23[%c0_31, %c8] : memref<8x16xbf16, #tpu.memory_space<vmem>>, vector<8x8xbf16>
    tpu.vector_store %arg23[%c0_31, %c8], %61 {strides = array<i32>} : memref<8x16xbf16, #tpu.memory_space<vmem>>, vector<8x8xbf16>,
    %c0_32 = arith.constant 0 : index
    %c0_33 = arith.constant 0 : index
    %63 = vector.load %arg23[%c0_32, %c0_33] : memref<8x16xbf16, #tpu.memory_space<vmem>>, vector<8x16xbf16>
    %c0_34 = arith.constant 0 : index
    %c0_35 = arith.constant 0 : index
    %64 = vector.load %arg10[%c0_34, %c0_35] : memref<16x32xbf16, #tpu.memory_space<vmem>>, vector<16x32xbf16>
    %cst_36 = arith.constant dense<0.000000e+00> : vector<8x32xf32>
    %65 = tpu.matmul %63, %64, %cst_36 {dimension_numbers = #tpu.dot_dimension_numbers<[1], [0], [0], [1], [0, 0, 1, 1], [], []>} : vector<8x16xbf16>, vector<16x32xbf16>, vector<8x32xf32> -> vector<8x32xf32>
    %c0_37 = arith.constant 0 : index
    %c0_38 = arith.constant 0 : index
    %66 = vector.load %arg11[%c0_37, %c0_38] : memref<1x32xf32, #tpu.memory_space<vmem>>, vector<1x32xf32>
    %67 = vector.broadcast %66 : vector<1x32xf32> to vector<8x32xf32>
    %68 = arith.addf %65, %67 : vector<8x32xf32>
    %69 = arith.addf %7, %68 : vector<8x32xf32>
    %c0_39 = arith.constant 0 : index
    %c0_40 = arith.constant 0 : index
    %70 = vector.load %arg12[%c0_39, %c0_40] : memref<1x32xf32, #tpu.memory_space<vmem>>, vector<1x32xf32>
    %c0_41 = arith.constant 0 : index
    %c0_42 = arith.constant 0 : index
    %71 = vector.load %arg13[%c0_41, %c0_42] : memref<1x32xf32, #tpu.memory_space<vmem>>, vector<1x32xf32>
    %cst_43 = arith.constant dense<0.000000e+00> : vector<8xf32>
    %72 = vector.multi_reduction <add>, %69, %cst_43 [1] : vector<8x32xf32> to vector<8xf32>
    %73 = vector.shape_cast %72 : vector<8xf32> to vector<8x1xf32>
    %cst_44 = arith.constant 3.200000e+01 : f32
    %74 = vector.broadcast %cst_44 : f32 to vector<8x1xf32>
    %75 = arith.divf %73, %74 : vector<8x1xf32>
    %76 = vector.broadcast %75 : vector<8x1xf32> to vector<8x32xf32>
    %77 = arith.subf %69, %76 : vector<8x32xf32>
    %78 = arith.mulf %77, %77 : vector<8x32xf32>
    %cst_45 = arith.constant dense<0.000000e+00> : vector<8xf32>
    %79 = vector.multi_reduction <add>, %78, %cst_45 [1] : vector<8x32xf32> to vector<8xf32>
    %80 = vector.shape_cast %79 : vector<8xf32> to vector<8x1xf32>
    %cst_46 = arith.constant 3.200000e+01 : f32
    %81 = vector.broadcast %cst_46 : f32 to vector<8x1xf32>
    %82 = arith.divf %80, %81 : vector<8x1xf32>
    %cst_47 = arith.constant 9.99999996E-13 : f32
    %83 = vector.broadcast %cst_47 : f32 to vector<8x1xf32>
    %84 = arith.addf %82, %83 : vector<8x1xf32>
    %85 = math.rsqrt %84 : vector<8x1xf32>
    %86 = vector.broadcast %85 : vector<8x1xf32> to vector<8x32xf32>
    %87 = arith.mulf %77, %86 : vector<8x32xf32>
    %88 = vector.broadcast %70 : vector<1x32xf32> to vector<8x32xf32>
    %89 = arith.mulf %87, %88 : vector<8x32xf32>
    %90 = vector.broadcast %71 : vector<1x32xf32> to vector<8x32xf32>
    %91 = arith.addf %89, %90 : vector<8x32xf32>
    %92 = arith.truncf %91 : vector<8x32xf32> to vector<8x32xbf16>
    %c0_48 = arith.constant 0 : index
    %c0_49 = arith.constant 0 : index
    %93 = vector.load %arg14[%c0_48, %c0_49] : memref<32x64xbf16, #tpu.memory_space<vmem>>, vector<32x64xbf16>
    %cst_50 = arith.constant dense<0.000000e+00> : vector<8x64xf32>
    %94 = tpu.matmul %92, %93, %cst_50 {dimension_numbers = #tpu.dot_dimension_numbers<[1], [0], [0], [1], [0, 0, 1, 1], [], []>} : vector<8x32xbf16>, vector<32x64xbf16>, vector<8x64xf32> -> vector<8x64xf32>
    %c0_51 = arith.constant 0 : index
    %c0_52 = arith.constant 0 : index
    %95 = vector.load %arg15[%c0_51, %c0_52] : memref<1x64xf32, #tpu.memory_space<vmem>>, vector<1x64xf32>
    %96 = vector.broadcast %95 : vector<1x64xf32> to vector<8x64xf32>
    %97 = arith.addf %94, %96 : vector<8x64xf32>
    %cst_53 = arith.constant 5.000000e-01 : f32
    %98 = vector.broadcast %cst_53 : f32 to vector<8x64xf32>
    %99 = arith.mulf %98, %97 : vector<8x64xf32>
    %cst_54 = arith.constant 4.471500e-02 : f32
    %100 = vector.broadcast %cst_54 : f32 to vector<8x64xf32>
    %101 = arith.mulf %100, %97 : vector<8x64xf32>
    %102 = arith.mulf %101, %97 : vector<8x64xf32>
    %103 = arith.mulf %102, %97 : vector<8x64xf32>
    %104 = arith.addf %97, %103 : vector<8x64xf32>
    %cst_55 = arith.constant 0.797884583 : f32
    %105 = vector.broadcast %cst_55 : f32 to vector<8x64xf32>
    %106 = arith.mulf %105, %104 : vector<8x64xf32>
    %107 = math.tanh %106 : vector<8x64xf32>
    %cst_56 = arith.constant 1.000000e+00 : f32
    %108 = vector.broadcast %cst_56 : f32 to vector<8x64xf32>
    %109 = arith.addf %108, %107 : vector<8x64xf32>
    %110 = arith.mulf %99, %109 : vector<8x64xf32>
    %111 = arith.truncf %110 : vector<8x64xf32> to vector<8x64xbf16>
    %c0_57 = arith.constant 0 : index
    %c0_58 = arith.constant 0 : index
    %112 = vector.load %arg16[%c0_57, %c0_58] : memref<64x32xbf16, #tpu.memory_space<vmem>>, vector<64x32xbf16>
    %cst_59 = arith.constant dense<0.000000e+00> : vector<8x32xf32>
    %113 = tpu.matmul %111, %112, %cst_59 {dimension_numbers = #tpu.dot_dimension_numbers<[1], [0], [0], [1], [0, 0, 1, 1], [], []>} : vector<8x64xbf16>, vector<64x32xbf16>, vector<8x32xf32> -> vector<8x32xf32>
    %c0_60 = arith.constant 0 : index
    %c0_61 = arith.constant 0 : index
    %114 = vector.load %arg17[%c0_60, %c0_61] : memref<1x32xf32, #tpu.memory_space<vmem>>, vector<1x32xf32>
    %115 = vector.broadcast %114 : vector<1x32xf32> to vector<8x32xf32>
    %116 = arith.addf %113, %115 : vector<8x32xf32>
    %117 = arith.addf %91, %116 : vector<8x32xf32>
    %c0_62 = arith.constant 0 : index
    %c0_63 = arith.constant 0 : index
    %118 = vector.load %arg18[%c0_62, %c0_63] : memref<1x32xf32, #tpu.memory_space<vmem>>, vector<1x32xf32>
    %c0_64 = arith.constant 0 : index
    %c0_65 = arith.constant 0 : index
    %119 = vector.load %arg19[%c0_64, %c0_65] : memref<1x32xf32, #tpu.memory_space<vmem>>, vector<1x32xf32>
    %cst_66 = arith.constant dense<0.000000e+00> : vector<8xf32>
    %120 = vector.multi_reduction <add>, %117, %cst_66 [1] : vector<8x32xf32> to vector<8xf32>
    %121 = vector.shape_cast %120 : vector<8xf32> to vector<8x1xf32>
    %cst_67 = arith.constant 3.200000e+01 : f32
    %122 = vector.broadcast %cst_67 : f32 to vector<8x1xf32>
    %123 = arith.divf %121, %122 : vector<8x1xf32>
    %124 = vector.broadcast %123 : vector<8x1xf32> to vector<8x32xf32>
    %125 = arith.subf %117, %124 : vector<8x32xf32>
    %126 = arith.mulf %125, %125 : vector<8x32xf32>
    %cst_68 = arith.constant dense<0.000000e+00> : vector<8xf32>
    %127 = vector.multi_reduction <add>, %126, %cst_68 [1] : vector<8x32xf32> to vector<8xf32>
    %128 = vector.shape_cast %127 : vector<8xf32> to vector<8x1xf32>
    %cst_69 = arith.constant 3.200000e+01 : f32
    %129 = vector.broadcast %cst_69 : f32 to vector<8x1xf32>
    %130 = arith.divf %128, %129 : vector<8x1xf32>
    %cst_70 = arith.constant 9.99999996E-13 : f32
    %131 = vector.broadcast %cst_70 : f32 to vector<8x1xf32>
    %132 = arith.addf %130, %131 : vector<8x1xf32>
    %133 = math.rsqrt %132 : vector<8x1xf32>
    %134 = vector.broadcast %133 : vector<8x1xf32> to vector<8x32xf32>
    %135 = arith.mulf %125, %134 : vector<8x32xf32>
    %136 = vector.broadcast %118 : vector<1x32xf32> to vector<8x32xf32>
    %137 = arith.mulf %135, %136 : vector<8x32xf32>
    %138 = vector.broadcast %119 : vector<1x32xf32> to vector<8x32xf32>
    %139 = arith.addf %137, %138 : vector<8x32xf32>
    %140 = arith.truncf %139 : vector<8x32xf32> to vector<8x32xbf16>
    %c0_71 = arith.constant 0 : index
    %c0_72 = arith.constant 0 : index
    %c0_73 = arith.constant 0 : index
    %141 = vector.load %arg20[%c0_71, %c0_72, %c0_73] : memref<1x8x32xbf16, #tpu.memory_space<vmem>>, vector<1x8x32xbf16>
    %142 = vector.shape_cast %141 : vector<1x8x32xbf16> to vector<8x32xbf16>
    %143 = vector.shape_cast %140 : vector<8x32xbf16> to vector<1x8x32xbf16>
    tpu.vector_store %arg20[%c0_71, %c0_72, %c0_73], %143 {strides = array<i32>} : memref<1x8x32xbf16, #tpu.memory_space<vmem>>, vector<1x8x32xbf16>,
    return
  }
  func.func @transform_0(%arg0: i32, %arg1: i32) -> (i32, i32, i32) {
    %c0_i32 = arith.constant 0 : i32
    %c0_i32_0 = arith.constant 0 : i32
    %c0_i32_1 = arith.constant 0 : i32
    return %arg0, %c0_i32, %c0_i32_0 : i32, i32, i32
  }
  func.func @transform_1(%arg0: i32, %arg1: i32) -> (i32, i32, i32) {
    %c0_i32 = arith.constant 0 : i32
    %c0_i32_0 = arith.constant 0 : i32
    %c0_i32_1 = arith.constant 0 : i32
    return %arg0, %c0_i32, %c0_i32_0 : i32, i32, i32
  }
  func.func @transform_2(%arg0: i32, %arg1: i32) -> (i32, i32) {
    %c0_i32 = arith.constant 0 : i32
    %c0_i32_0 = arith.constant 0 : i32
    %c0_i32_1 = arith.constant 0 : i32
    return %c0_i32, %c0_i32_0 : i32, i32
  }
  func.func @transform_3(%arg0: i32, %arg1: i32) -> (i32, i32) {
    %c0_i32 = arith.constant 0 : i32
    %c0_i32_0 = arith.constant 0 : i32
    %c0_i32_1 = arith.constant 0 : i32
    return %c0_i32, %c0_i32_0 : i32, i32
  }
  func.func @transform_4(%arg0: i32, %arg1: i32) -> (i32, i32) {
    %c0_i32 = arith.constant 0 : i32
    %c0_i32_0 = arith.constant 0 : i32
    %c0_i32_1 = arith.constant 0 : i32
    return %c0_i32, %c0_i32_0 : i32, i32
  }
  func.func @transform_5(%arg0: i32, %arg1: i32) -> (i32, i32) {
    %c0_i32 = arith.constant 0 : i32
    %c0_i32_0 = arith.constant 0 : i32
    %c0_i32_1 = arith.constant 0 : i32
    return %c0_i32, %c0_i32_0 : i32, i32
  }
  func.func @transform_6(%arg0: i32, %arg1: i32) -> (i32, i32) {
    %c0_i32 = arith.constant 0 : i32
    %c0_i32_0 = arith.constant 0 : i32
    %c0_i32_1 = arith.constant 0 : i32
    return %c0_i32, %c0_i32_0 : i32, i32
  }
  func.func @transform_7(%arg0: i32, %arg1: i32) -> (i32, i32) {
    %c0_i32 = arith.constant 0 : i32
    %c0_i32_0 = arith.constant 0 : i32
    %c0_i32_1 = arith.constant 0 : i32
    return %c0_i32, %c0_i32_0 : i32, i32
  }
  func.func @transform_8(%arg0: i32, %arg1: i32) -> (i32, i32) {
    %c0_i32 = arith.constant 0 : i32
    %c0_i32_0 = arith.constant 0 : i32
    %c0_i32_1 = arith.constant 0 : i32
    return %c0_i32, %c0_i32_0 : i32, i32
  }
  func.func @transform_9(%arg0: i32, %arg1: i32) -> (i32, i32) {
    %c0_i32 = arith.constant 0 : i32
    %c0_i32_0 = arith.constant 0 : i32
    %c0_i32_1 = arith.constant 0 : i32
    return %c0_i32, %c0_i32_0 : i32, i32
  }
  func.func @transform_10(%arg0: i32, %arg1: i32) -> (i32, i32) {
    %c0_i32 = arith.constant 0 : i32
    %c0_i32_0 = arith.constant 0 : i32
    %c0_i32_1 = arith.constant 0 : i32
    return %c0_i32, %c0_i32_0 : i32, i32
  }
  func.func @transform_11(%arg0: i32, %arg1: i32) -> (i32, i32) {
    %c0_i32 = arith.constant 0 : i32
    %c0_i32_0 = arith.constant 0 : i32
    %c0_i32_1 = arith.constant 0 : i32
    return %c0_i32, %c0_i32_0 : i32, i32
  }
  func.func @transform_12(%arg0: i32, %arg1: i32) -> (i32, i32) {
    %c0_i32 = arith.constant 0 : i32
    %c0_i32_0 = arith.constant 0 : i32
    %c0_i32_1 = arith.constant 0 : i32
    return %c0_i32, %c0_i32_0 : i32, i32
  }
  func.func @transform_13(%arg0: i32, %arg1: i32) -> (i32, i32) {
    %c0_i32 = arith.constant 0 : i32
    %c0_i32_0 = arith.constant 0 : i32
    %c0_i32_1 = arith.constant 0 : i32
    return %c0_i32, %c0_i32_0 : i32, i32
  }
  func.func @transform_14(%arg0: i32, %arg1: i32) -> (i32, i32) {
    %c0_i32 = arith.constant 0 : i32
    %c0_i32_0 = arith.constant 0 : i32
    %c0_i32_1 = arith.constant 0 : i32
    return %c0_i32, %c0_i32_0 : i32, i32
  }
  func.func @transform_15(%arg0: i32, %arg1: i32) -> (i32, i32) {
    %c0_i32 = arith.constant 0 : i32
    %c0_i32_0 = arith.constant 0 : i32
    %c0_i32_1 = arith.constant 0 : i32
    return %c0_i32, %c0_i32_0 : i32, i32
  }
  func.func @transform_16(%arg0: i32, %arg1: i32) -> (i32, i32) {
    %c0_i32 = arith.constant 0 : i32
    %c0_i32_0 = arith.constant 0 : i32
    %c0_i32_1 = arith.constant 0 : i32
    return %c0_i32, %c0_i32_0 : i32, i32
  }
  func.func @transform_17(%arg0: i32, %arg1: i32) -> (i32, i32) {
    %c0_i32 = arith.constant 0 : i32
    %c0_i32_0 = arith.constant 0 : i32
    %c0_i32_1 = arith.constant 0 : i32
    return %c0_i32, %c0_i32_0 : i32, i32
  }
  func.func @transform_18(%arg0: i32, %arg1: i32) -> (i32, i32, i32) {
    %c0_i32 = arith.constant 0 : i32
    %c0_i32_0 = arith.constant 0 : i32
    return %arg0, %arg1, %c0_i32 : i32, i32, i32
  }
}

</mosaic_0001>

<bundles_post_ra>
// kernel: tpu_custom_call.1
= control target key start
LH: loop header
LB: loop body
LE: loop exit
PB: predicated region body
PF: predicated region fallthrough
CT: control target
= control target key end

     0   :  { %s2107_s0 = inlined_call_operand.vmem [shape: f32[2,8,32], index: 0, kind: input, shape index: {}]   ;;  %s2108_s1 = inlined_call_operand.vmem [shape: f32[2,1,8], index: 1, kind: input, shape index: {}]   ;;  %s2109_s2 = inlined_call_operand.vmem [shape: bf16[32,16], index: 2, kind: input, shape index: {}]   ;;  %s2110_s3 = inlined_call_operand.vmem [shape: f32[1,16], index: 3, kind: input, shape index: {}]   ;;  %s2111_s4 = inlined_call_operand.vmem [shape: bf16[32,16], index: 4, kind: input, shape index: {}]   ;;  %s2112_s5 = inlined_call_operand.vmem [shape: f32[1,16], index: 5, kind: input, shape index: {}]   ;;  %s2113_s6 = inlined_call_operand.vmem [shape: bf16[32,16], index: 6, kind: input, shape index: {}]   ;;  %s2114_s7 = inlined_call_operand.vmem [shape: f32[1,16], index: 7, kind: input, shape index: {}]   ;;  %s2115_s8 = inlined_call_operand.vmem [shape: bf16[16,32], index: 8, kind: input, shape index: {}]   ;;  %s2116_s9 = inlined_call_operand.vmem [shape: f32[1,32], index: 9, kind: input, shape index: {}]   ;;  %s2117_s10 = inlined_call_operand.vmem [shape: f32[1,32], index: 10, kind: input, shape index: {}]   ;;  %s2118_s11 = inlined_call_operand.vmem [shape: f32[1,32], index: 11, kind: input, shape index: {}]   ;;  %s2119_s12 = inlined_call_operand.vmem [shape: bf16[32,64], index: 12, kind: input, shape index: {}]   ;;  %s2120_s13 = inlined_call_operand.vmem [shape: f32[1,64], index: 13, kind: input, shape index: {}]   ;;  %s2121_s14 = inlined_call_operand.vmem [shape: bf16[64,32], index: 14, kind: input, shape index: {}]   ;;  %s2122_s15 = inlined_call_operand.vmem [shape: f32[1,32], index: 15, kind: input, shape index: {}]   ;;  %s2123_s16 = inlined_call_operand.vmem [shape: f32[1,32], index: 16, kind: input, shape index: {}]   ;;  %s2124_s17 = inlined_call_operand.vmem [shape: f32[1,32], index: 17, kind: input, shape index: {}]   ;;  %s2125_s18 = inlined_call_operand.hbm [shape: bf16[2,8,32], index: 18, kind: output, shape index: {}]  }
   0x1   :  { %2132 = sst [smem:[#allocation14_spill]] %s2107_s0 }
   0x2   :  { %2133 = sst [smem:[#allocation15_spill]] %s2108_s1 }
   0x3   :  { %2134 = sst [smem:[#allocation16_spill]] %s2109_s2 }
   0x4   :  { %2135 = sst [smem:[#allocation17_spill]] %s2110_s3 }
   0x5   :  { %2136 = sst [smem:[#allocation18_spill]] %s2111_s4 }
   0x6   :  { %23 = vsyncpa [#allocation6], 0 }
   0x7   :  { %25 = vsyncpa [#allocation6 + $0x1], 0  ;;  %s1862_s27 = smov 0   ;;  %s1864_s28 = smov 0  }
   0x8   :  { %s1866_s29 = smov 0   ;;  %s1868_s30 = smov 0  }
   0x9   :  { %s1870_s0 = smov 0   ;;  %s1872_s19 = smov 0  }
   0xa LB: > { %2137 = sst [smem:[#allocation8_spill]] %s1740_s27  ;;  %s1446_s1 = sadd.s32 4294967295, %s1760_s19   ;;  %s1760_s19 = sphi %s1872_s19, %s31_s19   ;;  %s1756_s0 = sphi %s1870_s0, %s2156_s0   ;;  %s1752_s30 = sphi %s1868_s30, %s2155_s30   ;;  %s1748_s29 = sphi %s1866_s29, %s2154_s29   ;;  %s1744_s28 = sphi %s1864_s28, %s2158_s28   ;;  %s1740_s27 = sphi %s1862_s27, %s2157_s27  }
   0xb   : > { %2138 = sst [smem:[#allocation9_spill]] %s1748_s29  ;;  %s1447_s20 = sadd.s32 4294967294, %s1760_s19  }
   0xc   : > { %2139 = sst [smem:[#allocation10_spill]] %s1756_s0  ;;  %s43_s21 = sadd.s32 1, %s1756_s0 }
   0xd   : > { %s440_s22 = sadd.s32 1, %s1748_s29  ;;  %p45_p0 = scmp.ge.s32.totalorder %s43_s21, 2 }
   0xe   : > { %p450_p1 = scmp.ne.s32.totalorder %s1748_s29, %s1744_s28  ;;  %p451_p2 = scmp.eq.s32.totalorder %s1446_s1, 1 }
   0xf   : > { %p456_p3 = scmp.ne.s32.totalorder %s1744_s28, %s1740_s27  ;;  %s2160_s21 = smov (%p45_p0, %s43_s21), 0 }
  0x10   : > { %2140 = sst [smem:[#allocation11_spill]] %s2160_s21  ;;  %p1902_p4 = por %p451_p2, %p450_p1 }
  0x11   : > { %p457_p5 = scmp.eq.s32.totalorder %s1447_s20, 1  ;;  %s435_s23 = ssub.s32 %s1756_s0, %s2160_s21 }
  0x12   : > { %p1450_p6 = scmp.ge.s32.totalorder %s1760_s19, 1  ;;  %p438_p7 = scmp.eq.s32.totalorder %s435_s23, 0 }
  0x13   : > { %p1909_p8 = por %p457_p5, %p456_p3  ;;  %p536_p9 = scmp.lt.s32.totalorder %s1760_s19, 3 }
  0x14   : > { %s1915_s25 = scalar_select %p438_p7, %s1748_s29, %s440_s22  }
  0x15   : > { %s2142_s24 = scalar_select %p1909_p8, 1, 0 }
  0x16   : > { %2144 = sst [smem:[#allocation13_spill]] %s1915_s25  ;;  %p537_p10 = pnand %p1450_p6, %p536_p9 }
  0x17   : > { %2143 = sst [smem:[#allocation12_spill]] %s2142_s24  ;;  %p592_p11 = scmp.lt.s32.totalorder (!%p537_p10), %s1752_s30, 1 }
  0x18   : > { %540 = sbr.rel (%p537_p10) target bundleno = 2447 (0x98f), region = 92  ;;  %s2145_s4 = sld [smem:[#allocation18_spill]] (!%p537_p10) }
  0x19   : > { %s2146_s0 = sld [smem:[#allocation16_spill]] (!%p537_p10)  ;;  %s589_s1 = sand.u32 (!%p537_p10), 1, %s1744_s28  }
  0x1a   : > { %s2149_s3 = sld [smem:[#allocation17_spill]] (!%p537_p10)  ;;  %s1451_s20 = sshll.u32 (!%p537_p10), %s589_s1, 2 }
  0x1b   : > { %s1353_s23 = scalar_lea.sflag (!%p537_p10), [#allocation6], %s589_s1 }
  0x1d   : > { %v1762_v1 = vmov 0.0   ;;  %vm1763_vm0 = vmmov 0   ;;  %s1932_s22 = scalar_select %p592_p11, %s1752_s30, 1  ;;  %vm629_vm1 = vcmask 261120   ;;  %v1661_v7 = vld [vmem:[%s2113_s6 + $0x8] sm:$0xff]   ;;  %v1662_v8 = vld [vmem:[%s2113_s6] sm:$0xff]  }
  0x1e   : > { %v1657_v0 = vld [vmem:[%s2145_s4 + $0x8] sm:$0xff]   ;;  %1524 = vmatprep.subr.bf16.mxu0 %v1762_v1  ;;  %1532 = vmatprep.subr.bf16.mxu1 %v1762_v1  ;;  %v1658_v2 = vld [vmem:[%s2145_s4] sm:$0xff]   ;;  %s2148_s4 = sld [smem:[#allocation14_spill]]  ;;  %vm737_vm2 = vcmask 60416   ;;  %vm838_vm3 = vcmask 64512   ;;  %vm901_vm4 = vcmask 1043456  }
  0x1f   : > { %1525 = vmatpush3.bf16.msra.mxu0 %v1657_v0  ;;  %1528 = vmatprep.mubr.msk.bf16.mxu0 %vm1763_vm0, %v1762_v1  ;;  %s1452_s26 = sshll.u32 %s1932_s22, 3  ;;  %s2147_s25 = smov %s2146_s0  ;;  %v1659_v3 = vld [vmem:[%s2146_s0 + $0x8] sm:$0xff]   ;;  %v1453_v9 = vld [vmem:[%s2112_s5] ss:$0 sm:$0xff]  ;;  %vm1066_vm5 = vcmask 126016   ;;  %vm1084_vm6 = vcmask 130048  }
  0x20   : > { %1526 = vmatprep.subr.bf16.mxu0 %v1762_v1  ;;  %1536 = vmatprep.mubr.msk.bf16.mxu1 %vm1763_vm0, %v1762_v1  ;;  %v1660_v6 = vld [vmem:[%s2147_s25] sm:$0xff]   ;;  %s2150_s0 = sld [smem:[#allocation15_spill]]  ;;  %vm1275_vm7 = vcmask 523264   ;;  %vm1350_vm8 = vcmask 257024  }
  0x21   : > { %1533 = vmatpush3.bf16.msra.mxu1 %v1661_v7  ;;  %v1463_v16 = vld [vmem:[%s2149_s3] ss:$0 sm:$0xff] }
  0x22   : > { %1534 = vmatprep.subr.bf16.mxu1 %v1762_v1  ;;  %v1457_v26 = vld [vmem:[%s2114_s7] ss:$0 sm:$0xff] }
  0x23   : > { %1527 = vmatpush3.bf16.msra.mxu0 %v1658_v2 }
  0x24   : > { %s595_s29 = scalar_lea.vmem %s2148_s4, %s1452_s26  ;;  %1540 = vmatprep.subr.bf16.mxu0 %v1762_v1  ;;  %s1764_s26 = smov 120  }
  0x25   : > { %v1942_v4 = vld [vmem:[%s595_s29] sm:$0xff]  ;;  %1535 = vmatpush3.bf16.msra.mxu1 %v1662_v8  ;;  %s1766_s29 = smov [#allocation5]  }
  0x26   : > { %v605_v5 = vpack.c.bf16 %v1942_v4, %v1942_v4  ;;  %1548 = vmatprep.subr.bf16.mxu1 %v1762_v1  ;;  %s598_s21 = scalar_lea.vmem %s2150_s0, %s1932_s22  ;;  %s1491_s0 = sshll.u32 %s1752_s30, 6 }
  0x27   : > { %v1467_v39 = vld [vmem:[%s598_s21] ss:$0 sm:$0xff]  ;;  %s591_s21 = scalar_lea.vmem [#allocation5], %s1451_s20  ;;  %s1365_s3 = scalar_lea.hbm %s2125_s18, %s1491_s0 }
  0x28   : > { %1529 = vmatmul.mubr.msk.bf16.vlgmr.msra.gmra.mxu0 %vm629_vm1, %v605_v5  ;;  %1537 = vmatmul.mubr.msk.bf16.vlgmr.msra.gmra.mxu1 %vm629_vm1, %v605_v5  ;;  %s1367_s22 = sshll.u32 %s591_s21, 4  ;;  %s1688_s27 = sshll.u32 %s1766_s29, 4  ;;  %s1368_s22 = int_to_ptr.vmem [resolvable:$true] %s1367_s22  ;;  %s1689_s27 = int_to_ptr.vmem [resolvable:$false] %s1688_s27 }
  0x29   : > { %1541 = vmatpush3.bf16.msra.mxu0 %v1659_v3  ;;  %1544 = vmatprep.mubr.msk.bf16.mxu0 %vm1763_vm0, %v1762_v1  ;;  %s1684_s4 = scalar_lea.vmem %s1368_s22, 64  ;;  %s1690_s30 = scalar_lea.vmem %s1689_s27, 128 }
  0x2a   : > { %1542 = vmatprep.subr.bf16.mxu0 %v1762_v1  ;;  %1550 = vmatprep.mubr.msk.bf16.mxu1 %vm1763_vm0, %v1762_v1  ;;  %p1685_p12 = scmp.ne.s32.totalorder %s1368_s22, %s1684_s4  ;;  %p1691_p1 = scmp.lt.s32.totalorder %s1368_s22, %s1689_s27 }
  0x2b   : > { %p1692_p2 = scmp.lt.s32.totalorder %s1690_s30, %s1684_s4 }
  0x2c   : > { %p1686_p13 = pnand %p1685_p12, %p1902_p4 }
  0x2d   : > { %1543 = vmatpush3.bf16.msra.mxu0 %v1660_v6  ;;  %p1693_p3 = por %p1692_p2, %p1691_p1 }
  0x2e   : > { %1554 = vmatprep.subr.bf16.mxu0 %v1762_v1  ;;  %p1687_p0 = pneg %p1686_p13 }
  0x30   : > { %1545 = vmatmul.mubr.msk.bf16.vlgmr.msra.gmra.mxu0 %vm629_vm1, %v605_v5  ;;  %p1694_p5 = pnand %p1693_p3, %p1687_p0 }
  0x31   : > { %1556 = vmatprep.mubr.msk.bf16.mxu0 %vm1763_vm0, %v1762_v1 }
  0xe8   : > { %v667_v10 = vpop.f32.mrf.mxu0  ;;  %v730_v27 = vpop.f32.mrf.mxu1 }
  0xe9   : > { %v668_v11 = vadd.f32 %v1453_v9, %v667_v10  ;;  %v731_v28 = vadd.f32 %v1457_v26, %v730_v27 }
  0xea   : > { %v1530_v12 = vpop.f32.mrf.mxu0  ;;  %v1538_v29 = vpop.f32.mrf.mxu1 }
  0xeb   : > { %v736_v13 = vpack.c.bf16 %v668_v11, %v668_v11  ;;  %v739_v30 = vpack.c.bf16 %v731_v28, %v731_v28 }
  0xec   : > { %v670_v14 = vpop.f32.mrf.mxu0  ;;  %v733_v31 = vpop.f32.mrf.mxu1 }
  0xed   : > { %738 = vst.msk [vmem:[#allocation2] sm:$0xf] %vm737_vm2, %v736_v13  ;;  %744 = vrot.lane.b32.xlu0 %v736_v13, %s1764_s26  ;;  %740 = vst.msk [vmem:[#allocation3] sm:$0xf] %vm737_vm2, %v739_v30 }
  0xee   : > { %v1531_v15 = vpop.f32.mrf.mxu0  ;;  %v1539_v32 = vpop.f32.mrf.mxu1 }
  0xf0   : > { %v822_v17 = vpop.f32.mrf.mxu0 }
  0xf1   : > { %v823_v18 = vadd.f32 %v1463_v16, %v822_v17  ;;  %v1663_v16 = vld [vmem:[%s2115_s8] sm:$0xff]  }
  0xf2   : > { %v1546_v19 = vpop.f32.mrf.mxu0 }
  0xf3   : > { %v828_v20 = vmul.f32 0.35355338, %v823_v18 }
  0xf4   : > { %v825_v21 = vpop.f32.mrf.mxu0  ;;  %v837_v22 = vld [vmem:[#allocation2] sm:$0xf]  ;;  %v897_v33 = vld [vmem:[#allocation3] sm:$0xf] }
  0xf5   : > { %v829_v23 = vpack.c.bf16 %v828_v20, %v828_v20  ;;  %v843_v24 = vsel %vm838_vm3, %v837_v22, 0  ;;  %v903_v34 = vsel %vm901_vm4, %v897_v33, 0 }
  0xf6   : > { %v1547_v25 = vpop.f32.mrf.mxu0  ;;  %1549 = vmatpush3.bf16.xpose.msra.mxu1 %v843_v24  ;;  %1555 = vmatpush3.bf16.msra.mxu0 %v903_v34  ;;  %v1473_v24 = vld [vmem:[%s2116_s9] ss:$0 sm:$0xff] }
  0xf7   : > { %951 = vrot.lane.b32.xlu0 %v829_v23, %s1764_s26  ;;  %1560 = vmatprep.subr.bf16.mxu1 %v1762_v1 }
  0xf8   : > { %1566 = vmatprep.subr.bf16.mxu0 %v1762_v1 }
  0xfd   : > { %1551 = vmatmul.mubr.msk.bf16.vlgmr.msra.gmra.mxu1 %vm838_vm3, %v829_v23 }
  0xfe   : > { %1562 = vmatprep.mubr.msk.bf16.mxu1 %vm1763_vm0, %v1762_v1 }
 0x15f   : > { %v745_v35 = vpop.permute.xlu0 %744 }
 0x160   : > { %748 = vst.msk [vmem:[#allocation2 + $0x4] sm:$0xf] %vm737_vm2, %v745_v35 }
 0x167   : > { %v949_v36 = vld [vmem:[#allocation2 + $0x4] sm:$0xf] }
 0x168   : > { %v957_v37 = vsel %vm838_vm3, %v949_v36, 0 }
 0x169   : > { %1561 = vmatpush3.bf16.xpose.msra.mxu1 %v957_v37  ;;  %v952_v38 = vpop.permute.xlu0 %951  ;;  %v1664_v37 = vld [vmem:[%s2119_s12 + $0x8] sm:$0xff]  }
 0x16a   : > { %1572 = vmatprep.subr.bf16.mxu1 %v1762_v1 }
 0x170   : > { %1563 = vmatmul.mubr.msk.bf16.vlgmr.msra.gmra.mxu1 %vm838_vm3, %v952_v38 }
 0x171   : > { %1574 = vmatprep.mubr.msk.bf16.mxu1 %vm1763_vm0, %v1762_v1  ;;  %1573 = vmatpush3.bf16.msra.mxu1 %v1663_v16 }
 0x172   : > { %1586 = vmatprep.subr.bf16.mxu1 %v1762_v1 }
 0x1bd   : > { %v879_v40 = vpop.f32.mrf.mxu1 }
 0x1be   : > { %v880_v41 = vadd.f32 %v1467_v39, %v879_v40 }
 0x1bf   : > { %v1552_v42 = vpop.f32.mrf.mxu1 }
 0x1c0   : > { %v885_v43 = vsel %vm838_vm3, %v880_v41, -inf  ;;  %v1476_v42 = vld [vmem:[%s2117_s10] ss:$0 sm:$0xff] }
 0x1c1   : > { %886 = vmax.xlane.f32.xlu1 %v885_v43  ;;  %v882_v44 = vpop.f32.mrf.mxu1 }
 0x1c2   : > { %v1477_v44 = vld [vmem:[%s2118_s11] ss:$0 sm:$0xff] }
 0x1c3   : > { %v1553_v45 = vpop.f32.mrf.mxu1 }
 0x230   : > { %v993_v46 = vpop.f32.mrf.mxu1 }
 0x231   : > { %v994_v47 = vadd.f32 %v1467_v39, %v993_v46 }
 0x232   : > { %v1564_v48 = vpop.f32.mrf.mxu1 }
 0x233   : > { %v999_v49 = vsel %vm838_vm3, %v994_v47, -inf  ;;  %v1666_v48 = vld [vmem:[%s2121_s14 + $0x18] sm:$0xff]  }
 0x234   : > { %1000 = vmax.xlane.f32.xlu1 %v999_v49  ;;  %v996_v50 = vpop.f32.mrf.mxu1  ;;  %v1667_v49 = vld [vmem:[%s2121_s14 + $0x10] sm:$0xff]  }
 0x235   : > { %v1668_v50 = vld [vmem:[%s2121_s14 + $0x8] sm:$0xff]  }
 0x236   : > { %v1565_v51 = vpop.f32.mrf.mxu1 }
 0x237   : > { %v1669_v51 = vld [vmem:[%s2121_s14] sm:$0xff]  }
 0x24a   : > { %v887_v52 = vpop.xlane.xlu1 %886 }
 0x24b   : > { %v888_v53 = vsub.f32 %v880_v41, %v887_v52  ;;  %v1478_v52 = vld [vmem:[%s2120_s13] ss:$0 sm:$0xff] }
 0x24d   : > { %v889_v54 = vmul.f32 1.442695, %v888_v53 }
 0x24f   : > { %1670 = vpow2.f32 %v889_v54 }
 0x25c   : > { %v1671_v55 = vpop.eup %1670 }
 0x25d   : > { %v891_v56 = vsel %vm838_vm3, %v1671_v55, 0.0 }
 0x25e   : > { %892 = vadd.xlane.f32.xlu0 %v891_v56 }
 0x2bd   : > { %v1001_v57 = vpop.xlane.xlu1 %1000 }
 0x2be   : > { %v1002_v58 = vsub.f32 %v994_v47, %v1001_v57 }
 0x2c0   : > { %v1003_v59 = vmul.f32 1.442695, %v1002_v58 }
 0x2c2   : > { %1672 = vpow2.f32 %v1003_v59 }
 0x2cf   : > { %v1673_v60 = vpop.eup %1672 }
 0x2d0   : > { %v1005_v61 = vsel %vm838_vm3, %v1673_v60, 0.0 }
 0x2d1   : > { %1006 = vadd.xlane.f32.xlu1 %v1005_v61 }
 0x2e2   : > { %752 = vrot.lane.b32.xlu1 %v739_v30, %s1764_s26  ;;  %s1765_s26 = smov 8  }
 0x2e7   : > { %v893_v62 = vpop.xlane.xlu0 %892 }
 0x2e8   : > { %1674 = vrcp.f32 %v893_v62 }
 0x2f5   : > { %v1675_v63 = vpop.eup %1674 }
 0x2f6   : > { %v895_v0 = vmul.f32 %v1675_v63, %v1671_v55 }
 0x2f8   : > { %v896_v2 = vpack.c.bf16 %v895_v0, %v895_v0 }
 0x2fa   : > { %1557 = vmatmul.mubr.msk.bf16.vlgmr.msra.gmra.mxu0 %vm838_vm3, %v896_v2 }
 0x2fb   : > { %1568 = vmatprep.mubr.msk.bf16.mxu0 %vm1763_vm0, %v1762_v1 }
 0x35a   : > { %v1007_v3 = vpop.xlane.xlu1 %1006 }
 0x35b   : > { %1676 = vrcp.f32 %v1007_v3 }
 0x35e   : > { %v753_v5 = vpop.permute.xlu1 %752 }
 0x35f   : > { %756 = vst.msk [vmem:[#allocation3 + $0x4] sm:$0xf] %vm737_vm2, %v753_v5  ;;  %v1482_v5 = vld [vmem:[%s2122_s15] ss:$0 sm:$0xff] }
 0x366   : > { %v1012_v6 = vld [vmem:[#allocation3 + $0x4] sm:$0xf] }
 0x367   : > { %v1017_v7 = vsel %vm901_vm4, %v1012_v6, 0 }
 0x368   : > { %v1677_v8 = vpop.eup %1676  ;;  %1567 = vmatpush3.bf16.msra.mxu0 %v1017_v7 }
 0x369   : > { %v1009_v9 = vmul.f32 %v1677_v8, %v1673_v60  ;;  %1578 = vmatprep.subr.bf16.mxu0 %v1762_v1 }
 0x36b   : > { %v1010_v10 = vpack.c.bf16 %v1009_v9, %v1009_v9 }
 0x36d   : > { %1569 = vmatmul.mubr.msk.bf16.vlgmr.msra.gmra.mxu0 %vm838_vm3, %v1010_v10 }
 0x36e   : > { %1582 = vmatprep.mubr.msk.bf16.mxu0 %vm1763_vm0, %v1762_v1  ;;  %1579 = vmatpush3.bf16.msra.mxu0 %v1664_v37 }
 0x36f   : > { %1580 = vmatprep.subr.bf16.mxu0 %v1762_v1 }
 0x3ba   : > { %v939_v11 = vpop.f32.mrf.mxu0 }
 0x3bb   : > { %v945_v12 = vpack.c.bf16 %v939_v11, %v939_v11 }
 0x3bc   : > { %v1558_v13 = vpop.f32.mrf.mxu0 }
 0x3bd   : > { %947 = vst.msk [vmem:[#allocation4] sm:$0xf] %vm737_vm2, %v945_v12 }
 0x3be   : > { %v942_v14 = vpop.f32.mrf.mxu0 }
 0x3c0   : > { %v1559_v15 = vpop.f32.mrf.mxu0 }
 0x42d   : > { %v1053_v17 = vpop.f32.mrf.mxu0 }
 0x42e   : > { %v1496_v18 = vpack.c.bf16 %v1053_v17, %v1053_v17 }
 0x42f   : > { %v1570_v19 = vpop.f32.mrf.mxu0 }
 0x430   : > { %1063 = vrot.lane.b32.xlu1 %v1496_v18, %s1765_s26 }
 0x431   : > { %v1056_v20 = vpop.f32.mrf.mxu0 }
 0x433   : > { %v1571_v21 = vpop.f32.mrf.mxu0 }
 0x4a2   : > { %v1064_v22 = vpop.permute.xlu1 %1063 }
 0x4a3   : > { %1067 = vst.msk [vmem:[#allocation4] sm:$0xf] %vm1066_vm5, %v1064_v22  ;;  %v1488_v22 = vld [vmem:[%s2123_s16] ss:$0 sm:$0xff] }
 0x4aa   : > { %v1068_v23 = vld [vmem:[#allocation4] sm:$0xf] }
 0x4ab   : > { %1575 = vmatmul.mubr.msk.bf16.vlgmr.msra.gmra.mxu1 %vm1084_vm6, %v1068_v23 }
 0x4ac   : > { %1594 = vmatprep.mubr.msk.bf16.mxu1 %vm1763_vm0, %v1762_v1  ;;  %1587 = vmatpush3.bf16.msra.mxu1 %v1666_v48 }
 0x4ad   : > { %1588 = vmatprep.subr.bf16.mxu1 %v1762_v1 }
 0x4b0   : > { %1589 = vmatpush3.bf16.msra.mxu1 %v1667_v49 }
 0x4b1   : > { %1590 = vmatprep.subr.bf16.mxu1 %v1762_v1 }
 0x4b4   : > { %1591 = vmatpush3.bf16.msra.mxu1 %v1668_v50 }
 0x4b5   : > { %1592 = vmatprep.subr.bf16.mxu1 %v1762_v1 }
 0x4b8   : > { %1593 = vmatpush3.bf16.msra.mxu1 %v1669_v51 }
 0x56b   : > { %v1122_v25 = vpop.f32.mrf.mxu1 }
 0x56c   : > { %v1123_v26 = vadd.f32 %v1473_v24, %v1122_v25  ;;  %v1489_v24 = vld [vmem:[%s2124_s17] ss:$0 sm:$0xff] }
 0x56d   : > { %v1576_v27 = vpop.f32.mrf.mxu1 }
 0x56e   : > { %v1128_v28 = vadd.f32 %v1123_v26, %v1942_v4  ;;  %v1665_v4 = vld [vmem:[%s2119_s12] sm:$0xff]  }
 0x56f   : > { %v1125_v29 = vpop.f32.mrf.mxu1  ;;  %1581 = vmatpush3.bf16.msra.mxu0 %v1665_v4 }
 0x570   : > { %v1131_v30 = vsel %vm629_vm1, %v1128_v28, 0.0 }
 0x571   : > { %1132 = vadd.xlane.f32.xlu1 %v1131_v30  ;;  %v1577_v31 = vpop.f32.mrf.mxu1 }
 0x5fa   : > { %v1133_v32 = vpop.xlane.xlu1 %1132 }
 0x5fb   : > { %v1135_v33 = vmul.f32 0.03125, %v1133_v32 }
 0x5fd   : > { %v1136_v34 = vsub.f32 %v1128_v28, %v1135_v33 }
 0x5ff   : > { %v1137_v35 = vmul.f32 %v1136_v34, %v1136_v34 }
 0x601   : > { %v1138_v36 = vsel %vm629_vm1, %v1137_v35, 0.0 }
 0x602   : > { %1139 = vadd.xlane.f32.xlu0 %v1138_v36 }
 0x68b   : > { %v1140_v38 = vpop.xlane.xlu0 %1139 }
 0x68c   : > { %v1141_v39 = vmul.f32 0.03125, %v1140_v38 }
 0x68e   : > { %v1142_v40 = vadd.f32 1e-12, %v1141_v39 }
 0x690   : > { %1678 = vrsqrt.f32 %v1142_v40 }
 0x69d   : > { %v1679_v41 = vpop.eup %1678 }
 0x69e   : > { %v1144_v43 = vmul.f32 %v1679_v41, %v1136_v34 }
 0x6a0   : > { %v1151_v45 = vmul.f32 %v1476_v42, %v1144_v43 }
 0x6a2   : > { %v1158_v46 = vadd.f32 %v1477_v44, %v1151_v45 }
 0x6a4   : > { %v1159_v47 = vpack.c.bf16 %v1158_v46, %v1158_v46 }
 0x6a6   : > { %1583 = vmatmul.mubr.msk.bf16.vlgmr.msra.gmra.mxu0 %vm629_vm1, %v1159_v47 }
 0x766   : > { %v1220_v53 = vpop.f32.mrf.mxu0 }
 0x767   : > { %v1221_v54 = vadd.f32 %v1478_v52, %v1220_v53 }
 0x768   : > { %v1584_v55 = vpop.f32.mrf.mxu0 }
 0x769   : > { %v1227_v56 = vmul.f32 0.044715, %v1221_v54  ;;  %v1226_v0 = vmul.f32 0.5, %v1221_v54 }
 0x76a   : > { %v1223_v57 = vpop.f32.mrf.mxu0 }
 0x76b   : > { %v1228_v58 = vmul.f32 %v1227_v56, %v1221_v54 }
 0x76c   : > { %v1585_v59 = vpop.f32.mrf.mxu0 }
 0x76d   : > { %v1229_v60 = vmul.f32 %v1228_v58, %v1221_v54 }
 0x76f   : > { %v1230_v61 = vadd.f32 %v1229_v60, %v1221_v54 }
 0x771   : > { %v1231_v62 = vmul.f32 0.7978846, %v1230_v61 }
 0x773   : > { %1680 = vtanh.f32 %v1231_v62 }
 0x780   : > { %v1681_v63 = vpop.eup %1680 }
 0x781   : > { %v1233_v2 = vadd.f32 1.0, %v1681_v63 }
 0x783   : > { %v1234_v1 = vmul.f32 %v1233_v2, %v1226_v0 }
 0x785   : > { %v1235_v3 = vpack.c.bf16 %v1234_v1, %v1234_v1 }
 0x787   : > { %1595 = vmatmul.mubr.msk.bf16.vlgmr.msra.gmra.mxu1 %vm1275_vm7, %v1235_v3 }
 0x847   : > { %v1313_v6 = vpop.f32.mrf.mxu1 }
 0x848   : > { %v1314_v7 = vadd.f32 %v1482_v5, %v1313_v6 }
 0x849   : > { %v1596_v8 = vpop.f32.mrf.mxu1 }
 0x84a   : > { %v1319_v9 = vadd.f32 %v1314_v7, %v1158_v46 }
 0x84b   : > { %v1316_v10 = vpop.f32.mrf.mxu1 }
 0x84c   : > { %v1322_v11 = vsel %vm629_vm1, %v1319_v9, 0.0 }
 0x84d   : > { %1323 = vadd.xlane.f32.xlu0 %v1322_v11  ;;  %v1597_v12 = vpop.f32.mrf.mxu1 }
 0x8d6   : > { %v1324_v13 = vpop.xlane.xlu0 %1323 }
 0x8d7   : > { %v1325_v14 = vmul.f32 0.03125, %v1324_v13 }
 0x8d9   : > { %v1326_v15 = vsub.f32 %v1319_v9, %v1325_v14 }
 0x8db   : > { %v1327_v16 = vmul.f32 %v1326_v15, %v1326_v15 }
 0x8dd   : > { %v1328_v17 = vsel %vm629_vm1, %v1327_v16, 0.0 }
 0x8de   : > { %1329 = vadd.xlane.f32.xlu0 %v1328_v17 }
 0x967   : > { %v1330_v18 = vpop.xlane.xlu0 %1329 }
 0x968   : > { %v1331_v19 = vmul.f32 0.03125, %v1330_v18 }
 0x96a   : > { %v1332_v20 = vadd.f32 1e-12, %v1331_v19 }
 0x96c   : > { %1682 = vrsqrt.f32 %v1332_v20 }
 0x979   : > { %v1683_v21 = vpop.eup %1682 }
 0x97a   : > { %v1334_v23 = vmul.f32 %v1683_v21, %v1326_v15 }
 0x97c   : > { %v1341_v25 = vmul.f32 %v1488_v22, %v1334_v23 }
 0x97e   : > { %v1348_v26 = vadd.f32 %v1489_v24, %v1341_v25 }
 0x980   : > { %v1349_v27 = vpack.c.bf16 %v1348_v26, %v1348_v26 }
 0x982   : > { %1351 = vst.msk [vmem:[%s591_s21] sm:$0xf] %vm1350_vm8, %v1349_v27 }
 0x983   : > { %1697 = shalt.err (!%p1694_p5)
}
 0x984   : > { %s1698_s20 = scalar_lea.hbm %s1365_s3, 64  ;;  %s1702_s21 = scalar_lea.hbm %s2125_s18, 128 }
 0x985   : > { %p1699_p6 = scmp.ne.s32.totalorder %s1365_s3, %s1698_s20  ;;  %p1703_p10 = scmp.lt.s32.totalorder %s1365_s3, %s2125_s18 }
 0x986   : > { %p1704_p11 = scmp.lt.s32.totalorder %s1702_s21, %s1698_s20 }
 0x987   : > { %p1700_p7 = pnand %p1699_p6, %p1902_p4 }
 0x988   : > { %p1705_p12 = por %p1704_p11, %p1703_p10 }
 0x989   : > { %p1701_p9 = pneg %p1700_p7 }
 0x98b   : > { %p1706_p13 = pnand %p1705_p12, %p1701_p9 }
 0x98d   : > { %1709 = shalt.err (!%p1706_p13)
}
 0x98e   : > { %1598 = dma.vmem_to_hbm [thread:$0]  (%p1902_p4), %s1368_s22, 64, %s1365_s3, %s1353_s23  }
 0x98f PF: > { %s2151_s4 = sld [smem:[#allocation8_spill]]  ;;  %p1604_p0 = scmp.ge.s32.totalorder %s1760_s19, 2 }
 0x991   : > { %p1601_p1 = pnand %p1604_p0, %p1909_p8 }
 0x993   : > { %p1602_p2 = pneg %p1601_p1 }
 0x995   : > { %s1379_s27 = sand.u32 1, %s2151_s4  }
 0x996   : > { %s1380_s30 = scalar_lea.sflag [#allocation6], %s1379_s27 }
 0x997   : > { %1735 = dma.done.wait (%p1602_p2), %s1380_s30, 64  }
 0x998   : > { %1737 = vsyncadd (%p1602_p2), %s1380_s30, 4294967232  ;;  %s31_s19 = sadd.s32 1, %s1760_s19   ;;  %s2153_s20 = sld [smem:[#allocation9_spill]] }
 0x999   : > { %p28_p3 = scmp.ge.s32.totalorder %s31_s19, 4   ;;  %s2154_s29 = sld [smem:[#allocation13_spill]] }
 0x99a   : > { %s2155_s30 = sld [smem:[#allocation10_spill]]  ;;  %s2157_s27 = smov %s1744_s28 }
 0x99b   : > { %s2156_s0 = sld [smem:[#allocation11_spill]]  ;;  %30 = sbr.rel (!%p28_p3) target bundleno = 10 (0xa), region = 139 }
 0x99e   : > { %s2158_s28 = smov %s2153_s20 }
 0x9a0   :  { %1385 = vsyncpa [#allocation6], 1 }
 0x9a1   :  { %1387 = vsyncpa [#allocation6 + $0x1], 1 }

</bundles_post_ra>
